<compile_context>
chip_gen: v7x
topology: tpu7x:2x2x1
jax: 0.10.0
libtpu: 0.0.40
codegen_flags: <defaults>
</compile_context>

<pallas_src>
import functools

import jax
import jax.numpy as jnp
from jax.experimental import pallas as pl
from jax.experimental.pallas import tpu as pltpu

LEAKY_SLOPE = 0.01  # PyTorch nn.LeakyReLU default negative_slope


def _round_up(x: int, m: int) -> int:
    return -(-x // m) * m


def _fused_mlp_kernel(*refs, n_layers: int, slope: float):
    """refs = (x_ref, w0, b0, w1, b1, ..., w_{n-1}, b_{n-1}, o_ref).

    h = LeakyReLU(...LeakyReLU(x @ W0 + b0)...) @ W_{n-1} + b_{n-1}
    computed entirely in-register with f32 accumulation; one output store.
    """
    x_ref = refs[0]
    o_ref = refs[-1]
    h = x_ref[...]
    for i in range(n_layers):
        w = refs[1 + 2 * i][...]
        b = refs[2 + 2 * i][...].astype(jnp.float32)
        # Feed the MXU in the weights' dtype (native bf16 path when weights are
        # bf16); always accumulate in f32.
        lhs = h.astype(jnp.float32) if w.dtype == jnp.float32 else h.astype(w.dtype)
        h = jnp.dot(lhs, w, preferred_element_type=jnp.float32) + b  # (TB,Fo)+(1,Fo)
        if i < n_layers - 1:  # last Linear has no activation (modules.pop())
            # LeakyReLU as max(h, slope*h): 2 VALU ops instead of cmp+mul+select.
            h = jnp.maximum(h, jnp.float32(slope) * h)
    o_ref[...] = h.astype(o_ref.dtype)


def _pad_hidden(params):
    """Pad intermediate out-features (and the next layer's in-features) up to a
    multiple of 128 with zeros so all inner matmuls / activations are lane-dense.
    The first layer's in-features and the last layer's out-features are NOT
    padded (that would amplify HBM reads/writes of x / the output)."""
    n = len(params)
    padded = []
    prev_pad = 0  # zero rows to prepend-pad into this layer's W (= previous out pad)
    for i, (w, b) in enumerate(params):
        _, fo = w.shape
        if prev_pad:
            w = jnp.pad(w, ((0, prev_pad), (0, 0)))
        fo_pad = (_round_up(max(fo, 128), 128) - fo) if i < n - 1 else 0
        if fo_pad:
            w = jnp.pad(w, ((0, 0), (0, fo_pad)))
            b = jnp.pad(b, ((0, 0), (0, fo_pad)))
        padded.append((w, b))
        prev_pad = fo_pad
    return padded


def _build_in_specs(layer_params, tb, f_in, buffered_weights: bool):
    in_specs = [pl.BlockSpec((tb, f_in), lambda i: (i, 0))]
    for (w, b) in layer_params:
        fi, fo = w.shape
        if buffered_weights:
            # Constant index_map -> resident block; Buffered(1) avoids paying a
            # pointless second buffer (halves weight VMEM, matters on v7x 64 MiB).
            in_specs.append(pl.BlockSpec((fi, fo), lambda i: (0, 0),
                                         pipeline_mode=pl.Buffered(1)))
            in_specs.append(pl.BlockSpec((1, fo), lambda i: (0, 0),
                                         pipeline_mode=pl.Buffered(1)))
        else:
            in_specs.append(pl.BlockSpec((fi, fo), lambda i: (0, 0)))
            in_specs.append(pl.BlockSpec((1, fo), lambda i: (0, 0)))
    return in_specs


def prediction_model_forward(x, params, *, block_batch: int = 1024):
    """Fused forward pass of the whole MLP in a single pallas_call.

    x: (B, F_in); params: list of (w: (F_in_i, F_out_i), b: (1, F_out_i)).
    """
    n = len(params)
    B, F_in = x.shape
    F_out = params[-1][0].shape[1]
    dtype = x.dtype

    layer_params = _pad_hidden(params)

    # --- batch tile: big (amortizes ~0.35us/step + small DMA bursts), sublane
    # aligned, and capped so the "parallel" grid has >= 2 steps whenever B > 8
    # (feeds both TensorCores on v7x; costless on single-TC v5e/v6e).
    tb = _round_up(min(block_batch, max(B, 8)), 8)
    if B > 8:
        tb = min(tb, _round_up(pl.cdiv(B, 2), 8))
    tb = max(tb, 8)
    B_pad = _round_up(B, tb)
    if B_pad != B:
        x = jnp.pad(x, ((0, B_pad - B), (0, 0)))
    grid = (B_pad // tb,)

    # --- explicit VMEM budget: 2x double-buffered x/out tiles + 1x resident params.
    bytes_resident = sum(int(w.size) * w.dtype.itemsize + int(b.size) * b.dtype.itemsize
                         for (w, b) in layer_params)
    bytes_io = (2 * tb * F_in * x.dtype.itemsize
                + 2 * tb * F_out * jnp.dtype(dtype).itemsize)
    vmem_limit = int(min(120 << 20, max(32 << 20, bytes_resident + bytes_io + (8 << 20))))
    # TODO(synk): if bytes_resident ever approaches ~48 MiB (v7x), switch the
    # weights from full-resident blocks to a tiled K/N grid with an "arbitrary" axis.

    operands = [x]
    for (w, b) in layer_params:
        operands.extend((w, b))

    kernel = functools.partial(_fused_mlp_kernel, n_layers=n, slope=LEAKY_SLOPE)
    out_shape = jax.ShapeDtypeStruct((B_pad, F_out), dtype)  # F_out NOT padded
    out_spec = pl.BlockSpec((tb, F_out), lambda i: (i, 0))
    compiler_params = pltpu.CompilerParams(
        dimension_semantics=("parallel",),
        vmem_limit_bytes=vmem_limit,
    )

    def _call(buffered_weights: bool):
        return pl.pallas_call(
            kernel,
            out_shape=out_shape,
            grid=grid,
            in_specs=_build_in_specs(layer_params, tb, F_in, buffered_weights),
            out_specs=out_spec,
            compiler_params=compiler_params,
        )(*operands)

    try:
        out = _call(True)
    except Exception:
        # Fallback for toolchains that reject single-buffered resident blocks.
        out = _call(False)

    return out[:B, :]


def init_params(layers, key, dtype=jnp.float32):
    """Deterministic parameter init matching nn.Linear shapes (layer = (in, out))."""
    params = []
    for (f_in, f_out) in layers:
        key, kw, kb = jax.random.split(key, 3)
        bound = 1.0 / jnp.sqrt(jnp.float32(f_in))  # PyTorch-style uniform bound
        w = jax.random.uniform(kw, (f_in, f_out), dtype, -bound, bound)
        b = jax.random.uniform(kb, (1, f_out), dtype, -bound, bound)
        params.append((w, b))
    return params


def _reference_forward(x, params):
    n = len(params)
    x = x.astype(jnp.float32)
    for i, (w, b) in enumerate(params):
        x = x @ w.astype(jnp.float32) + b.astype(jnp.float32)
        if i < n - 1:
            x = jnp.where(x >= 0, x, LEAKY_SLOPE * x)
    return x


if __name__ == "__main__":
    # Small MLP: layers = [(32, 64), (64, 64), (64, 16)]
    layers = [(32, 64), (64, 64), (64, 16)]

    key = jax.random.PRNGKey(0)
    key, kx1, kx2 = jax.random.split(key, 3)
    params = init_params(layers, key)

    # Case 1: tiny batch (single grid step, whole MLP fused in one launch).
    x1 = jax.random.normal(kx1, (8, layers[0][0]), jnp.float32)
    out1 = jax.block_until_ready(prediction_model_forward(x1, params))
    ref1 = _reference_forward(x1, params)
    assert out1.shape == (8, layers[-1][1])
    assert jnp.allclose(out1, ref1, atol=1e-5, rtol=1e-5)

    # Case 2: larger, non-multiple batch -> exercises the >=2-step parallel grid,
    # batch padding, hidden-width padding, and resident-weight blocks.
    x2 = jax.random.normal(kx2, (200, layers[0][0]), jnp.float32)
    out2 = jax.block_until_ready(prediction_model_forward(x2, params))
    ref2 = _reference_forward(x2, params)
    assert out2.shape == (200, layers[-1][1])
    assert jnp.allclose(out2, ref2, atol=1e-5, rtol=1e-5)

    # Case 3: explicit small tile to force a 4-step grid.
    out3 = jax.block_until_ready(
        prediction_model_forward(x2, params, block_batch=64)
    )
    assert jnp.allclose(out3, ref2, atol=1e-5, rtol=1e-5)

    print("KERNEL_OK")
</pallas_src>

<mosaic_0001>
module attributes {stable_mosaic.version = 11 : i64} {
  func.func @_fused_mlp_kernel(%arg0: i32, %arg1: memref<8x32xf32, #tpu.memory_space<vmem>>, %arg2: memref<32x128xf32, #tpu.memory_space<vmem>>, %arg3: memref<1x128xf32, #tpu.memory_space<vmem>>, %arg4: memref<128x128xf32, #tpu.memory_space<vmem>>, %arg5: memref<1x128xf32, #tpu.memory_space<vmem>>, %arg6: memref<128x16xf32, #tpu.memory_space<vmem>>, %arg7: memref<1x16xf32, #tpu.memory_space<vmem>>, %arg8: memref<8x16xf32, #tpu.memory_space<vmem>>) attributes {dimension_semantics = [#tpu.dimension_semantics<parallel>], iteration_bounds = array<i64: 1>, scalar_prefetch = 0 : i64, scratch_operands = 0 : i64, tpu.core_type = #tpu.core_type<tc>, window_params = [{transform_indices = @transform_0, window_bounds = array<i64: 8, 32>}, {pipeline_mode = #tpu.pipeline_mode<synchronous>, transform_indices = @transform_1, window_bounds = array<i64: 32, 128>}, {pipeline_mode = #tpu.pipeline_mode<synchronous>, transform_indices = @transform_2, window_bounds = array<i64: 1, 128>}, {pipeline_mode = #tpu.pipeline_mode<synchronous>, transform_indices = @transform_3, window_bounds = array<i64: 128, 128>}, {pipeline_mode = #tpu.pipeline_mode<synchronous>, transform_indices = @transform_4, window_bounds = array<i64: 1, 128>}, {pipeline_mode = #tpu.pipeline_mode<synchronous>, transform_indices = @transform_5, window_bounds = array<i64: 128, 16>}, {pipeline_mode = #tpu.pipeline_mode<synchronous>, transform_indices = @transform_6, window_bounds = array<i64: 1, 16>}, {transform_indices = @transform_7, window_bounds = array<i64: 8, 16>}]} {
    %c0 = arith.constant 0 : index
    %c0_0 = arith.constant 0 : index
    %0 = vector.load %arg1[%c0, %c0_0] : memref<8x32xf32, #tpu.memory_space<vmem>>, vector<8x32xf32>
    %c0_1 = arith.constant 0 : index
    %c0_2 = arith.constant 0 : index
    %1 = vector.load %arg2[%c0_1, %c0_2] : memref<32x128xf32, #tpu.memory_space<vmem>>, vector<32x128xf32>
    %c0_3 = arith.constant 0 : index
    %c0_4 = arith.constant 0 : index
    %2 = vector.load %arg3[%c0_3, %c0_4] : memref<1x128xf32, #tpu.memory_space<vmem>>, vector<1x128xf32>
    %cst = arith.constant dense<0.000000e+00> : vector<8x128xf32>
    %3 = tpu.matmul %0, %1, %cst {dimension_numbers = #tpu.dot_dimension_numbers<[1], [0], [0], [1], [0, 0, 1, 1], [], []>} : vector<8x32xf32>, vector<32x128xf32>, vector<8x128xf32> -> vector<8x128xf32>
    %4 = vector.broadcast %2 : vector<1x128xf32> to vector<8x128xf32>
    %5 = arith.addf %3, %4 : vector<8x128xf32>
    %cst_5 = arith.constant 0.00999999977 : f32
    %6 = vector.broadcast %cst_5 : f32 to vector<8x128xf32>
    %7 = arith.mulf %6, %5 : vector<8x128xf32>
    %8 = arith.maximumf %5, %7 : vector<8x128xf32>
    %c0_6 = arith.constant 0 : index
    %c0_7 = arith.constant 0 : index
    %9 = vector.load %arg4[%c0_6, %c0_7] : memref<128x128xf32, #tpu.memory_space<vmem>>, vector<128x128xf32>
    %c0_8 = arith.constant 0 : index
    %c0_9 = arith.constant 0 : index
    %10 = vector.load %arg5[%c0_8, %c0_9] : memref<1x128xf32, #tpu.memory_space<vmem>>, vector<1x128xf32>
    %cst_10 = arith.constant dense<0.000000e+00> : vector<8x128xf32>
    %11 = tpu.matmul %8, %9, %cst_10 {dimension_numbers = #tpu.dot_dimension_numbers<[1], [0], [0], [1], [0, 0, 1, 1], [], []>} : vector<8x128xf32>, vector<128x128xf32>, vector<8x128xf32> -> vector<8x128xf32>
    %12 = vector.broadcast %10 : vector<1x128xf32> to vector<8x128xf32>
    %13 = arith.addf %11, %12 : vector<8x128xf32>
    %cst_11 = arith.constant 0.00999999977 : f32
    %14 = vector.broadcast %cst_11 : f32 to vector<8x128xf32>
    %15 = arith.mulf %14, %13 : vector<8x128xf32>
    %16 = arith.maximumf %13, %15 : vector<8x128xf32>
    %c0_12 = arith.constant 0 : index
    %c0_13 = arith.constant 0 : index
    %17 = vector.load %arg6[%c0_12, %c0_13] : memref<128x16xf32, #tpu.memory_space<vmem>>, vector<128x16xf32>
    %c0_14 = arith.constant 0 : index
    %c0_15 = arith.constant 0 : index
    %18 = vector.load %arg7[%c0_14, %c0_15] : memref<1x16xf32, #tpu.memory_space<vmem>>, vector<1x16xf32>
    %cst_16 = arith.constant dense<0.000000e+00> : vector<8x16xf32>
    %19 = tpu.matmul %16, %17, %cst_16 {dimension_numbers = #tpu.dot_dimension_numbers<[1], [0], [0], [1], [0, 0, 1, 1], [], []>} : vector<8x128xf32>, vector<128x16xf32>, vector<8x16xf32> -> vector<8x16xf32>
    %20 = vector.broadcast %18 : vector<1x16xf32> to vector<8x16xf32>
    %21 = arith.addf %19, %20 : vector<8x16xf32>
    %c0_17 = arith.constant 0 : index
    %c0_18 = arith.constant 0 : index
    %22 = vector.load %arg8[%c0_17, %c0_18] : memref<8x16xf32, #tpu.memory_space<vmem>>, vector<8x16xf32>
    tpu.vector_store %arg8[%c0_17, %c0_18], %21 {strides = array<i32>} : memref<8x16xf32, #tpu.memory_space<vmem>>, vector<8x16xf32>,
    return
  }
  func.func @transform_0(%arg0: i32) -> (i32, i32) {
    %c0_i32 = arith.constant 0 : i32
    %c0_i32_0 = arith.constant 0 : i32
    return %arg0, %c0_i32 : i32, i32
  }
  func.func @transform_1(%arg0: i32) -> (i32, i32) {
    %c0_i32 = arith.constant 0 : i32
    %c0_i32_0 = arith.constant 0 : i32
    %c0_i32_1 = arith.constant 0 : i32
    return %c0_i32, %c0_i32_0 : i32, i32
  }
  func.func @transform_2(%arg0: i32) -> (i32, i32) {
    %c0_i32 = arith.constant 0 : i32
    %c0_i32_0 = arith.constant 0 : i32
    %c0_i32_1 = arith.constant 0 : i32
    return %c0_i32, %c0_i32_0 : i32, i32
  }
  func.func @transform_3(%arg0: i32) -> (i32, i32) {
    %c0_i32 = arith.constant 0 : i32
    %c0_i32_0 = arith.constant 0 : i32
    %c0_i32_1 = arith.constant 0 : i32
    return %c0_i32, %c0_i32_0 : i32, i32
  }
  func.func @transform_4(%arg0: i32) -> (i32, i32) {
    %c0_i32 = arith.constant 0 : i32
    %c0_i32_0 = arith.constant 0 : i32
    %c0_i32_1 = arith.constant 0 : i32
    return %c0_i32, %c0_i32_0 : i32, i32
  }
  func.func @transform_5(%arg0: i32) -> (i32, i32) {
    %c0_i32 = arith.constant 0 : i32
    %c0_i32_0 = arith.constant 0 : i32
    %c0_i32_1 = arith.constant 0 : i32
    return %c0_i32, %c0_i32_0 : i32, i32
  }
  func.func @transform_6(%arg0: i32) -> (i32, i32) {
    %c0_i32 = arith.constant 0 : i32
    %c0_i32_0 = arith.constant 0 : i32
    %c0_i32_1 = arith.constant 0 : i32
    return %c0_i32, %c0_i32_0 : i32, i32
  }
  func.func @transform_7(%arg0: i32) -> (i32, i32) {
    %c0_i32 = arith.constant 0 : i32
    %c0_i32_0 = arith.constant 0 : i32
    return %arg0, %c0_i32 : i32, i32
  }
}

module attributes {stable_mosaic.version = 11 : i64} {
  func.func @_fused_mlp_kernel(%arg0: i32, %arg1: memref<8x32xf32, #tpu.memory_space<vmem>>, %arg2: memref<32x128xf32, #tpu.memory_space<vmem>>, %arg3: memref<1x128xf32, #tpu.memory_space<vmem>>, %arg4: memref<128x128xf32, #tpu.memory_space<vmem>>, %arg5: memref<1x128xf32, #tpu.memory_space<vmem>>, %arg6: memref<128x16xf32, #tpu.memory_space<vmem>>, %arg7: memref<1x16xf32, #tpu.memory_space<vmem>>, %arg8: memref<8x16xf32, #tpu.memory_space<vmem>>) attributes {dimension_semantics = [#tpu.dimension_semantics<parallel>], iteration_bounds = array<i64: 1>, scalar_prefetch = 0 : i64, scratch_operands = 0 : i64, tpu.core_type = #tpu.core_type<tc>, window_params = [{transform_indices = @transform_0, window_bounds = array<i64: 8, 32>}, {pipeline_mode = #tpu.pipeline_mode<synchronous>, transform_indices = @transform_1, window_bounds = array<i64: 32, 128>}, {pipeline_mode = #tpu.pipeline_mode<synchronous>, transform_indices = @transform_2, window_bounds = array<i64: 1, 128>}, {pipeline_mode = #tpu.pipeline_mode<synchronous>, transform_indices = @transform_3, window_bounds = array<i64: 128, 128>}, {pipeline_mode = #tpu.pipeline_mode<synchronous>, transform_indices = @transform_4, window_bounds = array<i64: 1, 128>}, {pipeline_mode = #tpu.pipeline_mode<synchronous>, transform_indices = @transform_5, window_bounds = array<i64: 128, 16>}, {pipeline_mode = #tpu.pipeline_mode<synchronous>, transform_indices = @transform_6, window_bounds = array<i64: 1, 16>}, {transform_indices = @transform_7, window_bounds = array<i64: 8, 16>}]} {
    %c0 = arith.constant 0 : index
    %c0_0 = arith.constant 0 : index
    %0 = vector.load %arg1[%c0, %c0_0] : memref<8x32xf32, #tpu.memory_space<vmem>>, vector<8x32xf32>
    %c0_1 = arith.constant 0 : index
    %c0_2 = arith.constant 0 : index
    %1 = vector.load %arg2[%c0_1, %c0_2] : memref<32x128xf32, #tpu.memory_space<vmem>>, vector<32x128xf32>
    %c0_3 = arith.constant 0 : index
    %c0_4 = arith.constant 0 : index
    %2 = vector.load %arg3[%c0_3, %c0_4] : memref<1x128xf32, #tpu.memory_space<vmem>>, vector<1x128xf32>
    %cst = arith.constant dense<0.000000e+00> : vector<8x128xf32>
    %3 = tpu.matmul %0, %1, %cst {dimension_numbers = #tpu.dot_dimension_numbers<[1], [0], [0], [1], [0, 0, 1, 1], [], []>} : vector<8x32xf32>, vector<32x128xf32>, vector<8x128xf32> -> vector<8x128xf32>
    %4 = vector.broadcast %2 : vector<1x128xf32> to vector<8x128xf32>
    %5 = arith.addf %3, %4 : vector<8x128xf32>
    %cst_5 = arith.constant 0.00999999977 : f32
    %6 = vector.broadcast %cst_5 : f32 to vector<8x128xf32>
    %7 = arith.mulf %6, %5 : vector<8x128xf32>
    %8 = arith.maximumf %5, %7 : vector<8x128xf32>
    %c0_6 = arith.constant 0 : index
    %c0_7 = arith.constant 0 : index
    %9 = vector.load %arg4[%c0_6, %c0_7] : memref<128x128xf32, #tpu.memory_space<vmem>>, vector<128x128xf32>
    %c0_8 = arith.constant 0 : index
    %c0_9 = arith.constant 0 : index
    %10 = vector.load %arg5[%c0_8, %c0_9] : memref<1x128xf32, #tpu.memory_space<vmem>>, vector<1x128xf32>
    %cst_10 = arith.constant dense<0.000000e+00> : vector<8x128xf32>
    %11 = tpu.matmul %8, %9, %cst_10 {dimension_numbers = #tpu.dot_dimension_numbers<[1], [0], [0], [1], [0, 0, 1, 1], [], []>} : vector<8x128xf32>, vector<128x128xf32>, vector<8x128xf32> -> vector<8x128xf32>
    %12 = vector.broadcast %10 : vector<1x128xf32> to vector<8x128xf32>
    %13 = arith.addf %11, %12 : vector<8x128xf32>
    %cst_11 = arith.constant 0.00999999977 : f32
    %14 = vector.broadcast %cst_11 : f32 to vector<8x128xf32>
    %15 = arith.mulf %14, %13 : vector<8x128xf32>
    %16 = arith.maximumf %13, %15 : vector<8x128xf32>
    %c0_12 = arith.constant 0 : index
    %c0_13 = arith.constant 0 : index
    %17 = vector.load %arg6[%c0_12, %c0_13] : memref<128x16xf32, #tpu.memory_space<vmem>>, vector<128x16xf32>
    %c0_14 = arith.constant 0 : index
    %c0_15 = arith.constant 0 : index
    %18 = vector.load %arg7[%c0_14, %c0_15] : memref<1x16xf32, #tpu.memory_space<vmem>>, vector<1x16xf32>
    %cst_16 = arith.constant dense<0.000000e+00> : vector<8x16xf32>
    %19 = tpu.matmul %16, %17, %cst_16 {dimension_numbers = #tpu.dot_dimension_numbers<[1], [0], [0], [1], [0, 0, 1, 1], [], []>} : vector<8x128xf32>, vector<128x16xf32>, vector<8x16xf32> -> vector<8x16xf32>
    %20 = vector.broadcast %18 : vector<1x16xf32> to vector<8x16xf32>
    %21 = arith.addf %19, %20 : vector<8x16xf32>
    %c0_17 = arith.constant 0 : index
    %c0_18 = arith.constant 0 : index
    %22 = vector.load %arg8[%c0_17, %c0_18] : memref<8x16xf32, #tpu.memory_space<vmem>>, vector<8x16xf32>
    tpu.vector_store %arg8[%c0_17, %c0_18], %21 {strides = array<i32>} : memref<8x16xf32, #tpu.memory_space<vmem>>, vector<8x16xf32>,
    return
  }
  func.func @transform_0(%arg0: i32) -> (i32, i32) {
    %c0_i32 = arith.constant 0 : i32
    %c0_i32_0 = arith.constant 0 : i32
    return %arg0, %c0_i32 : i32, i32
  }
  func.func @transform_1(%arg0: i32) -> (i32, i32) {
    %c0_i32 = arith.constant 0 : i32
    %c0_i32_0 = arith.constant 0 : i32
    %c0_i32_1 = arith.constant 0 : i32
    return %c0_i32, %c0_i32_0 : i32, i32
  }
  func.func @transform_2(%arg0: i32) -> (i32, i32) {
    %c0_i32 = arith.constant 0 : i32
    %c0_i32_0 = arith.constant 0 : i32
    %c0_i32_1 = arith.constant 0 : i32
    return %c0_i32, %c0_i32_0 : i32, i32
  }
  func.func @transform_3(%arg0: i32) -> (i32, i32) {
    %c0_i32 = arith.constant 0 : i32
    %c0_i32_0 = arith.constant 0 : i32
    %c0_i32_1 = arith.constant 0 : i32
    return %c0_i32, %c0_i32_0 : i32, i32
  }
  func.func @transform_4(%arg0: i32) -> (i32, i32) {
    %c0_i32 = arith.constant 0 : i32
    %c0_i32_0 = arith.constant 0 : i32
    %c0_i32_1 = arith.constant 0 : i32
    return %c0_i32, %c0_i32_0 : i32, i32
  }
  func.func @transform_5(%arg0: i32) -> (i32, i32) {
    %c0_i32 = arith.constant 0 : i32
    %c0_i32_0 = arith.constant 0 : i32
    %c0_i32_1 = arith.constant 0 : i32
    return %c0_i32, %c0_i32_0 : i32, i32
  }
  func.func @transform_6(%arg0: i32) -> (i32, i32) {
    %c0_i32 = arith.constant 0 : i32
    %c0_i32_0 = arith.constant 0 : i32
    %c0_i32_1 = arith.constant 0 : i32
    return %c0_i32, %c0_i32_0 : i32, i32
  }
  func.func @transform_7(%arg0: i32) -> (i32, i32) {
    %c0_i32 = arith.constant 0 : i32
    %c0_i32_0 = arith.constant 0 : i32
    return %arg0, %c0_i32 : i32, i32
  }
}

</mosaic_0001>

<bundles_post_ra>
// kernel: tpu_custom_call.1
= control target key start
LH: loop header
LB: loop body
LE: loop exit
PB: predicated region body
PF: predicated region fallthrough
CT: control target
= control target key end

     0   :  { %12 = vsyncpa [#allocation3], 0  ;;  %s767_s0 = inlined_call_operand.vmem [shape: f32[8,32], index: 0, kind: input, shape index: {}]   ;;  %s768_s1 = inlined_call_operand.hbm [shape: f32[32,128], index: 1, kind: input, shape index: {}]   ;;  %s769_s2 = inlined_call_operand.vmem [shape: f32[1,128], index: 2, kind: input, shape index: {}]   ;;  %s770_s3 = inlined_call_operand.vmem [shape: f32[128,128], index: 3, kind: input, shape index: {}]   ;;  %s771_s4 = inlined_call_operand.vmem [shape: f32[1,128], index: 4, kind: input, shape index: {}]   ;;  %s772_s5 = inlined_call_operand.vmem [shape: f32[128,16], index: 5, kind: input, shape index: {}]   ;;  %s773_s6 = inlined_call_operand.vmem [shape: f32[1,16], index: 6, kind: input, shape index: {}]   ;;  %s774_s7 = inlined_call_operand.hbm [shape: f32[8,16], index: 7, kind: output, shape index: {}]  }
   0x1   :  { %13 = vsyncpa [#allocation4], 0  ;;  %s567_s24 = smov [#allocation2]   ;;  %s519_s28 = scalar_lea.hbm %s768_s1, 512 }
   0x2   :  { %s21_s25 = sshll.u32 %s567_s24, 4  ;;  %p520_p0 = scmp.ne.s32.totalorder %s768_s1, %s519_s28  ;;  %s22_s25 = int_to_ptr.vmem [resolvable:$true] %s21_s25 }
   0x3   :  { %p523_p1 = scmp.lt.u32.totalorder %s519_s28, %s768_s1 }
   0x5   :  { %p525_p2 = pnand %p523_p1, %p520_p0 }
   0x7   :  { %528 = shalt.err (!%p525_p2)
}
   0x8   :  { %s529_s10 = scalar_lea.vmem %s22_s25, 512  ;;  %p534_p4 = scmp.lt.s32.totalorder %s22_s25, %s22_s25 }
   0x9   :  { %p530_p3 = scmp.ne.s32.totalorder %s22_s25, %s529_s10  ;;  %p535_p5 = scmp.lt.s32.totalorder %s529_s10, %s529_s10 }
   0xb   :  { %p536_p6 = por %p535_p5, %p534_p4 }
   0xd   :  { %p537_p7 = pnand %p536_p6, %p530_p3 }
   0xf   :  { %540 = shalt.err (!%p537_p7)
}
  0x10   :  { %s568_s11 = smov 128   ;;  %s569_s12 = smov 8  }
  0x11   :  { %27 = dma.hbm_to_vmem [thread:$0]  %s768_s1, 512, %s22_s25, [#allocation3], %s568_s11, %s568_s11, %s569_s12  }
  0x12   :  { %563 = dma.done.wait [#allocation3], 512  }
  0x13   :  { %564 = vsyncadd [#allocation3], 4294966784  ;;  %v570_v0 = vmov 0.0|0.0   ;;  %vm571_vm0 = vmmov 0   ;;  %v572_v1 = vmov 0.0   ;;  %v42_v2 = vld [vmem:[#allocation2] sm:$0xff] }
  0x14   :  { %458 = vmatprep.subr.bf16.mxu0 %v570_v0  ;;  %385 = vmatprep.mubr.msk.f32.mxu0 %vm571_vm0, %v572_v1  ;;  %v43_v3 = vld [vmem:[#allocation2 + $0x8] sm:$0xff]  ;;  %v44_v4 = vld [vmem:[#allocation2 + $0x10] sm:$0xff]  ;;  %v45_v6 = vld [vmem:[#allocation2 + $0x18] sm:$0xff]  ;;  %vm53_vm1 = vcmask 261120   ;;  %s573_s9 = smov [#allocation5]   ;;  %vm317_vm2 = vcmask 130048  }
  0x15   :  { %464 = vmatprep.subr.bf16.mxu1 %v570_v0  ;;  %420 = vmatprep.mubr.msk.f32.mxu1 %vm571_vm0, %v572_v1  ;;  %v459_v5 = vpack.c.bf16 %v43_v3, %v42_v2  ;;  %v129_v7 = vld [vmem:[%s770_s3] sm:$0xff]  ;;  %v130_v8 = vld [vmem:[%s770_s3 + $0x8] sm:$0xff]  ;;  %v131_v9 = vld [vmem:[%s770_s3 + $0x10] sm:$0xff]  ;;  %v462_v11 = vpack.c.bf16 %v45_v6, %v44_v4  ;;  %s325_s10 = sshll.u32 %s573_s9, 4  ;;  %s326_s10 = int_to_ptr.vmem [resolvable:$true] %s325_s10 }
  0x16   :  { %v132_v10 = vld [vmem:[%s770_s3 + $0x18] sm:$0xff]  ;;  %v465_v12 = vpack.c.bf16 %v130_v8, %v129_v7  ;;  %v133_v14 = vld [vmem:[%s770_s3 + $0x20] sm:$0xff]  ;;  %v134_v15 = vld [vmem:[%s770_s3 + $0x28] sm:$0xff]  ;;  %p546_p9 = scmp.lt.s32.totalorder %s326_s10, %s326_s10 }
  0x17   :  { %460 = vmatpush3.bf16.msra.mxu0 %v459_v5  ;;  %v468_v13 = vpack.c.bf16 %v132_v10, %v131_v9  ;;  %v41_v16 = vld [vmem:[%s767_s0] sm:$0xff]  ;;  %v471_v17 = vpack.c.bf16 %v134_v15, %v133_v14  ;;  %v135_v18 = vld [vmem:[%s770_s3 + $0x30] sm:$0xff]  ;;  %v136_v19 = vld [vmem:[%s770_s3 + $0x38] sm:$0xff] }
  0x18   :  { %461 = vmatprep.subr.bf16.mxu0 %v570_v0  ;;  %466 = vmatpush3.bf16.msra.mxu1 %v465_v12  ;;  %v474_v20 = vpack.c.bf16 %v136_v19, %v135_v18  ;;  %v137_v21 = vld [vmem:[%s770_s3 + $0x40] sm:$0xff]  ;;  %v138_v22 = vld [vmem:[%s770_s3 + $0x48] sm:$0xff]  ;;  %v139_v24 = vld [vmem:[%s770_s3 + $0x50] sm:$0xff] }
  0x19   :  { %467 = vmatprep.subr.bf16.mxu1 %v570_v0  ;;  %v477_v23 = vpack.c.bf16 %v138_v22, %v137_v21  ;;  %v140_v25 = vld [vmem:[%s770_s3 + $0x58] sm:$0xff]  ;;  %v141_v27 = vld [vmem:[%s770_s3 + $0x60] sm:$0xff]  ;;  %v142_v28 = vld [vmem:[%s770_s3 + $0x68] sm:$0xff] }
  0x1a   :  { %v480_v26 = vpack.c.bf16 %v140_v25, %v139_v24  ;;  %v483_v29 = vpack.c.bf16 %v142_v28, %v141_v27  ;;  %v143_v30 = vld [vmem:[%s770_s3 + $0x70] sm:$0xff]  ;;  %v144_v31 = vld [vmem:[%s770_s3 + $0x78] sm:$0xff]  ;;  %v224_v33 = vld [vmem:[%s772_s5] sm:$0xff] }
  0x1b   :  { %463 = vmatpush3.bf16.msra.mxu0 %v462_v11  ;;  %v486_v32 = vpack.c.bf16 %v144_v31, %v143_v30  ;;  %v225_v34 = vld [vmem:[%s772_s5 + $0x8] sm:$0xff]  ;;  %v226_v35 = vld [vmem:[%s772_s5 + $0x10] sm:$0xff]  ;;  %v227_v37 = vld [vmem:[%s772_s5 + $0x18] sm:$0xff] }
  0x1c   :  { %488 = vmatprep.subr.bf16.mxu0 %v570_v0  ;;  %469 = vmatpush3.bf16.msra.mxu1 %v468_v13  ;;  %v489_v36 = vpack.c.bf16 %v225_v34, %v224_v33  ;;  %v492_v38 = vpack.c.bf16 %v227_v37, %v226_v35  ;;  %v228_v39 = vld [vmem:[%s772_s5 + $0x20] sm:$0xff]  ;;  %v229_v40 = vld [vmem:[%s772_s5 + $0x28] sm:$0xff]  ;;  %v230_v42 = vld [vmem:[%s772_s5 + $0x30] sm:$0xff] }
  0x1d   :  { %470 = vmatprep.subr.bf16.mxu1 %v570_v0  ;;  %v495_v41 = vpack.c.bf16 %v229_v40, %v228_v39  ;;  %v231_v43 = vld [vmem:[%s772_s5 + $0x38] sm:$0xff]  ;;  %v232_v45 = vld [vmem:[%s772_s5 + $0x40] sm:$0xff]  ;;  %v233_v46 = vld [vmem:[%s772_s5 + $0x48] sm:$0xff] }
  0x1e   :  { %386 = vmatmul.mubr.msk.f32.vlgmr.msra.gmra.mrb[0].mxu0 %vm53_vm1, %v41_v16  ;;  %v498_v44 = vpack.c.bf16 %v231_v43, %v230_v42  ;;  %v501_v47 = vpack.c.bf16 %v233_v46, %v232_v45  ;;  %v234_v48 = vld [vmem:[%s772_s5 + $0x50] sm:$0xff]  ;;  %v235_v49 = vld [vmem:[%s772_s5 + $0x58] sm:$0xff]  ;;  %v334_v51 = vld [vmem:[%s769_s2] ss:$0 sm:$0xff] }
  0x1f   :  { %455 = vmatprep.mubr.msk.f32.mxu0 %vm571_vm0, %v572_v1  ;;  %490 = vmatpush3.bf16.msra.mxu0 %v489_v36  ;;  %v504_v50 = vpack.c.bf16 %v235_v49, %v234_v48  ;;  %v236_v57 = vld [vmem:[%s772_s5 + $0x60] sm:$0xff]  ;;  %v237_v58 = vld [vmem:[%s772_s5 + $0x68] sm:$0xff]  ;;  %v238_v60 = vld [vmem:[%s772_s5 + $0x70] sm:$0xff] }
  0x20   :  { %472 = vmatpush3.bf16.msra.mxu1 %v471_v17  ;;  %491 = vmatprep.subr.bf16.mxu0 %v570_v0  ;;  %v507_v59 = vpack.c.bf16 %v237_v58, %v236_v57  ;;  %v239_v61 = vld [vmem:[%s772_s5 + $0x78] sm:$0xff]  ;;  %v336_v63 = vld [vmem:[%s771_s4] ss:$0 sm:$0xff]  ;;  %s541_s5 = scalar_lea.vmem %s326_s10, 128 }
  0x21   :  { %473 = vmatprep.subr.bf16.mxu1 %v570_v0  ;;  %v510_v62 = vpack.c.bf16 %v239_v61, %v238_v60  ;;  %p542_p8 = scmp.ne.s32.totalorder %s326_s10, %s541_s5  ;;  %p547_p10 = scmp.lt.s32.totalorder %s541_s5, %s541_s5 }
  0x23   :  { %493 = vmatpush3.bf16.msra.mxu0 %v492_v38  ;;  %p548_p11 = por %p547_p10, %p546_p9 }
  0x24   :  { %475 = vmatpush3.bf16.msra.mxu1 %v474_v20  ;;  %494 = vmatprep.subr.bf16.mxu0 %v570_v0 }
  0x25   :  { %476 = vmatprep.subr.bf16.mxu1 %v570_v0  ;;  %p549_p12 = pnand %p548_p11, %p542_p8 }
  0x27   :  { %496 = vmatpush3.bf16.msra.mxu0 %v495_v41 }
  0x28   :  { %478 = vmatpush3.bf16.msra.mxu1 %v477_v23  ;;  %497 = vmatprep.subr.bf16.mxu0 %v570_v0 }
  0x29   :  { %479 = vmatprep.subr.bf16.mxu1 %v570_v0 }
  0x2b   :  { %499 = vmatpush3.bf16.msra.mxu0 %v498_v44 }
  0x2c   :  { %481 = vmatpush3.bf16.msra.mxu1 %v480_v26  ;;  %500 = vmatprep.subr.bf16.mxu0 %v570_v0 }
  0x2d   :  { %482 = vmatprep.subr.bf16.mxu1 %v570_v0 }
  0x2f   :  { %502 = vmatpush3.bf16.msra.mxu0 %v501_v47 }
  0x30   :  { %484 = vmatpush3.bf16.msra.mxu1 %v483_v29  ;;  %503 = vmatprep.subr.bf16.mxu0 %v570_v0 }
  0x31   :  { %485 = vmatprep.subr.bf16.mxu1 %v570_v0 }
  0x33   :  { %505 = vmatpush3.bf16.msra.mxu0 %v504_v50 }
  0x34   :  { %487 = vmatpush3.bf16.msra.mxu1 %v486_v32  ;;  %506 = vmatprep.subr.bf16.mxu0 %v570_v0 }
  0x37   :  { %508 = vmatpush3.bf16.msra.mxu0 %v507_v59 }
  0x38   :  { %509 = vmatprep.subr.bf16.mxu0 %v570_v0  ;;  %v337_v0 = vld [vmem:[%s773_s6] ss:$0 sm:$0xff] }
  0x3b   :  { %511 = vmatpush3.bf16.msra.mxu0 %v510_v62 }
  0xf1   :  { %v123_v52 = vpop.f32.mrb[0].mxu0 }
  0xf2   :  { %v124_v53 = vadd.f32 %v334_v51, %v123_v52  ;;  %v387_v54 = vpop.f32.mrb[1].mxu0 }
  0xf4   :  { %v127_v55 = vmul.f32 0.01, %v124_v53 }
  0xf6   :  { %v128_v56 = vmax.f32 %v124_v53, %v127_v55 }
  0xf8   :  { %421 = vmatmul.mubr.f32.vlgmr.msra.gmra.mrb[0].mxu1 %v128_v56 }
 0x1cb   :  { %v218_v1 = vpop.f32.mrb[0].mxu1 }
 0x1cc   :  { %v219_v2 = vadd.f32 %v336_v63, %v218_v1  ;;  %v422_v3 = vpop.f32.mrb[1].mxu1 }
 0x1ce   :  { %v222_v4 = vmul.f32 0.01, %v219_v2 }
 0x1d0   :  { %v223_v5 = vmax.f32 %v219_v2, %v222_v4 }
 0x1d2   :  { %456 = vmatmul.mubr.f32.vlgmr.msra.gmra.mrb[2].mxu0 %v223_v5 }
 0x2a5   :  { %v313_v6 = vpop.f32.mrb[2].mxu0 }
 0x2a6   :  { %v314_v7 = vadd.f32 %v337_v0, %v313_v6  ;;  %v457_v8 = vpop.f32.mrb[3].mxu0 }
 0x2a8   :  { %318 = vst.msk [vmem:[#allocation5] sm:$0xff] %vm317_vm2, %v314_v7 }
 0x2a9   :  { %552 = shalt.err (!%p549_p12)
}
 0x2aa   :  { %s553_s12 = scalar_lea.hbm %s774_s7, 128 }
 0x2ab   :  { %p554_p13 = scmp.ne.s32.totalorder %s774_s7, %s553_s12  ;;  %p557_p0 = scmp.lt.u32.totalorder %s553_s12, %s774_s7 }
 0x2ad   :  { %p559_p1 = pnand %p557_p0, %p554_p13 }
 0x2af   :  { %562 = shalt.err (!%p559_p1)
}
 0x2b0   :  { %328 = dma.vmem_to_hbm [thread:$0]  %s326_s10, 128, %s774_s7, [#allocation4]  }
 0x2b1   :  { %565 = dma.done.wait [#allocation4], 128  }
 0x2b2   :  { %566 = vsyncadd [#allocation4], 4294967168 }
 0x2b3   :  { %332 = vsyncpa [#allocation3], 1 }
 0x2b4   :  { %333 = vsyncpa [#allocation4], 1 }

// kernel: tpu_custom_call.1
= control target key start
LH: loop header
LB: loop body
LE: loop exit
PB: predicated region body
PF: predicated region fallthrough
CT: control target
= control target key end

     0   :  { %12 = vsyncpa [#allocation3], 0  ;;  %s767_s0 = inlined_call_operand.vmem [shape: f32[8,32], index: 0, kind: input, shape index: {}]   ;;  %s768_s1 = inlined_call_operand.hbm [shape: f32[32,128], index: 1, kind: input, shape index: {}]   ;;  %s769_s2 = inlined_call_operand.vmem [shape: f32[1,128], index: 2, kind: input, shape index: {}]   ;;  %s770_s3 = inlined_call_operand.vmem [shape: f32[128,128], index: 3, kind: input, shape index: {}]   ;;  %s771_s4 = inlined_call_operand.vmem [shape: f32[1,128], index: 4, kind: input, shape index: {}]   ;;  %s772_s5 = inlined_call_operand.vmem [shape: f32[128,16], index: 5, kind: input, shape index: {}]   ;;  %s773_s6 = inlined_call_operand.vmem [shape: f32[1,16], index: 6, kind: input, shape index: {}]   ;;  %s774_s7 = inlined_call_operand.hbm [shape: f32[8,16], index: 7, kind: output, shape index: {}]  }
   0x1   :  { %13 = vsyncpa [#allocation4], 0  ;;  %s567_s24 = smov [#allocation2]   ;;  %s519_s28 = scalar_lea.hbm %s768_s1, 512 }
   0x2   :  { %s21_s25 = sshll.u32 %s567_s24, 4  ;;  %p520_p0 = scmp.ne.s32.totalorder %s768_s1, %s519_s28  ;;  %s22_s25 = int_to_ptr.vmem [resolvable:$true] %s21_s25 }
   0x3   :  { %p523_p1 = scmp.lt.u32.totalorder %s519_s28, %s768_s1 }
   0x5   :  { %p525_p2 = pnand %p523_p1, %p520_p0 }
   0x7   :  { %528 = shalt.err (!%p525_p2)
}
   0x8   :  { %s529_s10 = scalar_lea.vmem %s22_s25, 512  ;;  %p534_p4 = scmp.lt.s32.totalorder %s22_s25, %s22_s25 }
   0x9   :  { %p530_p3 = scmp.ne.s32.totalorder %s22_s25, %s529_s10  ;;  %p535_p5 = scmp.lt.s32.totalorder %s529_s10, %s529_s10 }
   0xb   :  { %p536_p6 = por %p535_p5, %p534_p4 }
   0xd   :  { %p537_p7 = pnand %p536_p6, %p530_p3 }
   0xf   :  { %540 = shalt.err (!%p537_p7)
}
  0x10   :  { %s568_s11 = smov 128   ;;  %s569_s12 = smov 8  }
  0x11   :  { %27 = dma.hbm_to_vmem [thread:$0]  %s768_s1, 512, %s22_s25, [#allocation3], %s568_s11, %s568_s11, %s569_s12  }
  0x12   :  { %563 = dma.done.wait [#allocation3], 512  }
  0x13   :  { %564 = vsyncadd [#allocation3], 4294966784  ;;  %v570_v0 = vmov 0.0|0.0   ;;  %vm571_vm0 = vmmov 0   ;;  %v572_v1 = vmov 0.0   ;;  %v42_v2 = vld [vmem:[#allocation2] sm:$0xff] }
  0x14   :  { %458 = vmatprep.subr.bf16.mxu0 %v570_v0  ;;  %385 = vmatprep.mubr.msk.f32.mxu0 %vm571_vm0, %v572_v1  ;;  %v43_v3 = vld [vmem:[#allocation2 + $0x8] sm:$0xff]  ;;  %v44_v4 = vld [vmem:[#allocation2 + $0x10] sm:$0xff]  ;;  %v45_v6 = vld [vmem:[#allocation2 + $0x18] sm:$0xff]  ;;  %vm53_vm1 = vcmask 261120   ;;  %s573_s9 = smov [#allocation5]   ;;  %vm317_vm2 = vcmask 130048  }
  0x15   :  { %464 = vmatprep.subr.bf16.mxu1 %v570_v0  ;;  %420 = vmatprep.mubr.msk.f32.mxu1 %vm571_vm0, %v572_v1  ;;  %v459_v5 = vpack.c.bf16 %v43_v3, %v42_v2  ;;  %v129_v7 = vld [vmem:[%s770_s3] sm:$0xff]  ;;  %v130_v8 = vld [vmem:[%s770_s3 + $0x8] sm:$0xff]  ;;  %v131_v9 = vld [vmem:[%s770_s3 + $0x10] sm:$0xff]  ;;  %v462_v11 = vpack.c.bf16 %v45_v6, %v44_v4  ;;  %s325_s10 = sshll.u32 %s573_s9, 4  ;;  %s326_s10 = int_to_ptr.vmem [resolvable:$true] %s325_s10 }
  0x16   :  { %v132_v10 = vld [vmem:[%s770_s3 + $0x18] sm:$0xff]  ;;  %v465_v12 = vpack.c.bf16 %v130_v8, %v129_v7  ;;  %v133_v14 = vld [vmem:[%s770_s3 + $0x20] sm:$0xff]  ;;  %v134_v15 = vld [vmem:[%s770_s3 + $0x28] sm:$0xff]  ;;  %p546_p9 = scmp.lt.s32.totalorder %s326_s10, %s326_s10 }
  0x17   :  { %460 = vmatpush3.bf16.msra.mxu0 %v459_v5  ;;  %v468_v13 = vpack.c.bf16 %v132_v10, %v131_v9  ;;  %v41_v16 = vld [vmem:[%s767_s0] sm:$0xff]  ;;  %v471_v17 = vpack.c.bf16 %v134_v15, %v133_v14  ;;  %v135_v18 = vld [vmem:[%s770_s3 + $0x30] sm:$0xff]  ;;  %v136_v19 = vld [vmem:[%s770_s3 + $0x38] sm:$0xff] }
  0x18   :  { %461 = vmatprep.subr.bf16.mxu0 %v570_v0  ;;  %466 = vmatpush3.bf16.msra.mxu1 %v465_v12  ;;  %v474_v20 = vpack.c.bf16 %v136_v19, %v135_v18  ;;  %v137_v21 = vld [vmem:[%s770_s3 + $0x40] sm:$0xff]  ;;  %v138_v22 = vld [vmem:[%s770_s3 + $0x48] sm:$0xff]  ;;  %v139_v24 = vld [vmem:[%s770_s3 + $0x50] sm:$0xff] }
  0x19   :  { %467 = vmatprep.subr.bf16.mxu1 %v570_v0  ;;  %v477_v23 = vpack.c.bf16 %v138_v22, %v137_v21  ;;  %v140_v25 = vld [vmem:[%s770_s3 + $0x58] sm:$0xff]  ;;  %v141_v27 = vld [vmem:[%s770_s3 + $0x60] sm:$0xff]  ;;  %v142_v28 = vld [vmem:[%s770_s3 + $0x68] sm:$0xff] }
  0x1a   :  { %v480_v26 = vpack.c.bf16 %v140_v25, %v139_v24  ;;  %v483_v29 = vpack.c.bf16 %v142_v28, %v141_v27  ;;  %v143_v30 = vld [vmem:[%s770_s3 + $0x70] sm:$0xff]  ;;  %v144_v31 = vld [vmem:[%s770_s3 + $0x78] sm:$0xff]  ;;  %v224_v33 = vld [vmem:[%s772_s5] sm:$0xff] }
  0x1b   :  { %463 = vmatpush3.bf16.msra.mxu0 %v462_v11  ;;  %v486_v32 = vpack.c.bf16 %v144_v31, %v143_v30  ;;  %v225_v34 = vld [vmem:[%s772_s5 + $0x8] sm:$0xff]  ;;  %v226_v35 = vld [vmem:[%s772_s5 + $0x10] sm:$0xff]  ;;  %v227_v37 = vld [vmem:[%s772_s5 + $0x18] sm:$0xff] }
  0x1c   :  { %488 = vmatprep.subr.bf16.mxu0 %v570_v0  ;;  %469 = vmatpush3.bf16.msra.mxu1 %v468_v13  ;;  %v489_v36 = vpack.c.bf16 %v225_v34, %v224_v33  ;;  %v492_v38 = vpack.c.bf16 %v227_v37, %v226_v35  ;;  %v228_v39 = vld [vmem:[%s772_s5 + $0x20] sm:$0xff]  ;;  %v229_v40 = vld [vmem:[%s772_s5 + $0x28] sm:$0xff]  ;;  %v230_v42 = vld [vmem:[%s772_s5 + $0x30] sm:$0xff] }
  0x1d   :  { %470 = vmatprep.subr.bf16.mxu1 %v570_v0  ;;  %v495_v41 = vpack.c.bf16 %v229_v40, %v228_v39  ;;  %v231_v43 = vld [vmem:[%s772_s5 + $0x38] sm:$0xff]  ;;  %v232_v45 = vld [vmem:[%s772_s5 + $0x40] sm:$0xff]  ;;  %v233_v46 = vld [vmem:[%s772_s5 + $0x48] sm:$0xff] }
  0x1e   :  { %386 = vmatmul.mubr.msk.f32.vlgmr.msra.gmra.mrb[0].mxu0 %vm53_vm1, %v41_v16  ;;  %v498_v44 = vpack.c.bf16 %v231_v43, %v230_v42  ;;  %v501_v47 = vpack.c.bf16 %v233_v46, %v232_v45  ;;  %v234_v48 = vld [vmem:[%s772_s5 + $0x50] sm:$0xff]  ;;  %v235_v49 = vld [vmem:[%s772_s5 + $0x58] sm:$0xff]  ;;  %v334_v51 = vld [vmem:[%s769_s2] ss:$0 sm:$0xff] }
  0x1f   :  { %455 = vmatprep.mubr.msk.f32.mxu0 %vm571_vm0, %v572_v1  ;;  %490 = vmatpush3.bf16.msra.mxu0 %v489_v36  ;;  %v504_v50 = vpack.c.bf16 %v235_v49, %v234_v48  ;;  %v236_v57 = vld [vmem:[%s772_s5 + $0x60] sm:$0xff]  ;;  %v237_v58 = vld [vmem:[%s772_s5 + $0x68] sm:$0xff]  ;;  %v238_v60 = vld [vmem:[%s772_s5 + $0x70] sm:$0xff] }
  0x20   :  { %472 = vmatpush3.bf16.msra.mxu1 %v471_v17  ;;  %491 = vmatprep.subr.bf16.mxu0 %v570_v0  ;;  %v507_v59 = vpack.c.bf16 %v237_v58, %v236_v57  ;;  %v239_v61 = vld [vmem:[%s772_s5 + $0x78] sm:$0xff]  ;;  %v336_v63 = vld [vmem:[%s771_s4] ss:$0 sm:$0xff]  ;;  %s541_s5 = scalar_lea.vmem %s326_s10, 128 }
  0x21   :  { %473 = vmatprep.subr.bf16.mxu1 %v570_v0  ;;  %v510_v62 = vpack.c.bf16 %v239_v61, %v238_v60  ;;  %p542_p8 = scmp.ne.s32.totalorder %s326_s10, %s541_s5  ;;  %p547_p10 = scmp.lt.s32.totalorder %s541_s5, %s541_s5 }
  0x23   :  { %493 = vmatpush3.bf16.msra.mxu0 %v492_v38  ;;  %p548_p11 = por %p547_p10, %p546_p9 }
  0x24   :  { %475 = vmatpush3.bf16.msra.mxu1 %v474_v20  ;;  %494 = vmatprep.subr.bf16.mxu0 %v570_v0 }
  0x25   :  { %476 = vmatprep.subr.bf16.mxu1 %v570_v0  ;;  %p549_p12 = pnand %p548_p11, %p542_p8 }
  0x27   :  { %496 = vmatpush3.bf16.msra.mxu0 %v495_v41 }
  0x28   :  { %478 = vmatpush3.bf16.msra.mxu1 %v477_v23  ;;  %497 = vmatprep.subr.bf16.mxu0 %v570_v0 }
  0x29   :  { %479 = vmatprep.subr.bf16.mxu1 %v570_v0 }
  0x2b   :  { %499 = vmatpush3.bf16.msra.mxu0 %v498_v44 }
  0x2c   :  { %481 = vmatpush3.bf16.msra.mxu1 %v480_v26  ;;  %500 = vmatprep.subr.bf16.mxu0 %v570_v0 }
  0x2d   :  { %482 = vmatprep.subr.bf16.mxu1 %v570_v0 }
  0x2f   :  { %502 = vmatpush3.bf16.msra.mxu0 %v501_v47 }
  0x30   :  { %484 = vmatpush3.bf16.msra.mxu1 %v483_v29  ;;  %503 = vmatprep.subr.bf16.mxu0 %v570_v0 }
  0x31   :  { %485 = vmatprep.subr.bf16.mxu1 %v570_v0 }
  0x33   :  { %505 = vmatpush3.bf16.msra.mxu0 %v504_v50 }
  0x34   :  { %487 = vmatpush3.bf16.msra.mxu1 %v486_v32  ;;  %506 = vmatprep.subr.bf16.mxu0 %v570_v0 }
  0x37   :  { %508 = vmatpush3.bf16.msra.mxu0 %v507_v59 }
  0x38   :  { %509 = vmatprep.subr.bf16.mxu0 %v570_v0  ;;  %v337_v0 = vld [vmem:[%s773_s6] ss:$0 sm:$0xff] }
  0x3b   :  { %511 = vmatpush3.bf16.msra.mxu0 %v510_v62 }
  0xf1   :  { %v123_v52 = vpop.f32.mrb[0].mxu0 }
  0xf2   :  { %v124_v53 = vadd.f32 %v334_v51, %v123_v52  ;;  %v387_v54 = vpop.f32.mrb[1].mxu0 }
  0xf4   :  { %v127_v55 = vmul.f32 0.01, %v124_v53 }
  0xf6   :  { %v128_v56 = vmax.f32 %v124_v53, %v127_v55 }
  0xf8   :  { %421 = vmatmul.mubr.f32.vlgmr.msra.gmra.mrb[0].mxu1 %v128_v56 }
 0x1cb   :  { %v218_v1 = vpop.f32.mrb[0].mxu1 }
 0x1cc   :  { %v219_v2 = vadd.f32 %v336_v63, %v218_v1  ;;  %v422_v3 = vpop.f32.mrb[1].mxu1 }
 0x1ce   :  { %v222_v4 = vmul.f32 0.01, %v219_v2 }
 0x1d0   :  { %v223_v5 = vmax.f32 %v219_v2, %v222_v4 }
 0x1d2   :  { %456 = vmatmul.mubr.f32.vlgmr.msra.gmra.mrb[2].mxu0 %v223_v5 }
 0x2a5   :  { %v313_v6 = vpop.f32.mrb[2].mxu0 }
 0x2a6   :  { %v314_v7 = vadd.f32 %v337_v0, %v313_v6  ;;  %v457_v8 = vpop.f32.mrb[3].mxu0 }
 0x2a8   :  { %318 = vst.msk [vmem:[#allocation5] sm:$0xff] %vm317_vm2, %v314_v7 }
 0x2a9   :  { %552 = shalt.err (!%p549_p12)
}
 0x2aa   :  { %s553_s12 = scalar_lea.hbm %s774_s7, 128 }
 0x2ab   :  { %p554_p13 = scmp.ne.s32.totalorder %s774_s7, %s553_s12  ;;  %p557_p0 = scmp.lt.u32.totalorder %s553_s12, %s774_s7 }
 0x2ad   :  { %p559_p1 = pnand %p557_p0, %p554_p13 }
 0x2af   :  { %562 = shalt.err (!%p559_p1)
}
 0x2b0   :  { %328 = dma.vmem_to_hbm [thread:$0]  %s326_s10, 128, %s774_s7, [#allocation4]  }
 0x2b1   :  { %565 = dma.done.wait [#allocation4], 128  }
 0x2b2   :  { %566 = vsyncadd [#allocation4], 4294967168 }
 0x2b3   :  { %332 = vsyncpa [#allocation3], 1 }
 0x2b4   :  { %333 = vsyncpa [#allocation4], 1 }

</bundles_post_ra>
